<compile_context>
chip_gen: v5e
topology: v5e:2x2
jax: 0.10.0
libtpu: 0.0.40
codegen_flags: <defaults>
</compile_context>

<pallas_src>
import functools

import jax
import jax.numpy as jnp
from jax.experimental import pallas as pl
from jax.experimental.pallas import tpu as pltpu


# -----------------------------------------------------------------------------
# Primary path: direct HBM -> HBM DMA (no VMEM staging).
# -----------------------------------------------------------------------------
def _concat_dma_kernel(*refs, offsets, sizes, row_splits):
    """Issue one strided DMA per (input, row-chunk) into the output's column
    slice, then wait for all of them.  Inputs/output are raw HBM refs."""
    n_in = len(sizes)
    in_refs = refs[:n_in]
    out_ref = refs[n_in]
    sem = refs[n_in + 1]

    copies = []
    for i, (r, off, f) in enumerate(zip(in_refs, offsets, sizes)):
        for j, (r0, r1) in enumerate(row_splits):
            cp = pltpu.make_async_copy(
                r.at[r0:r1],
                out_ref.at[r0:r1, off:off + f],
                sem.at[i, j],
            )
            cp.start()
            copies.append(cp)
    for cp in copies:
        cp.wait()


def _row_splits(n, row_bytes, target_chunk_bytes=4 << 20, max_chunks=8):
    """Split the batch rows into a few contiguous chunks so several DMAs are
    in flight, without creating tiny descriptors."""
    total = n * row_bytes
    k = int(max(1, min(max_chunks, n, total // target_chunk_bytes)))
    rows_per = -(-n // k)
    splits = []
    r0 = 0
    while r0 < n:
        r1 = min(n, r0 + rows_per)
        splits.append((r0, r1))
        r0 = r1
    return tuple(splits)


def _concat_via_dma(xs_flat, offsets, sizes, n, f_total, dtype, itemsize):
    row_splits = _row_splits(n, f_total * itemsize)
    k = len(row_splits)

    kernel = functools.partial(
        _concat_dma_kernel, offsets=offsets, sizes=sizes, row_splits=row_splits)

    total_bytes = n * sum(sizes) * itemsize
    cost = pl.CostEstimate(
        flops=0, transcendentals=0, bytes_accessed=2 * total_bytes)

    return pl.pallas_call(
        kernel,
        out_shape=jax.ShapeDtypeStruct((n, f_total), dtype),
        in_specs=[pl.BlockSpec(memory_space=pl.ANY)] * len(sizes),
        out_specs=pl.BlockSpec(memory_space=pl.ANY),
        scratch_shapes=[pltpu.SemaphoreType.DMA((len(sizes), k))],
        cost_estimate=cost,
    )(*xs_flat)


# -----------------------------------------------------------------------------
# Fallback path: staged through VMEM (only for tiny per-row chunks).
# -----------------------------------------------------------------------------
def _concat_staged_kernel(*refs, offsets, sizes):
    in_refs = refs[:-1]
    out_ref = refs[-1]
    for r, off, f in zip(in_refs, offsets, sizes):
        # Static offsets -> plain slice stores (masked vst only when off/f are
        # not 128-aligned; acceptable for the tiny-chunk fallback).
        out_ref[:, off:off + f] = r[...]


def _sublane_multiple(itemsize):
    # Sub-32-bit dtypes pack along sublanes: 8 rows (f32), 16 (bf16), 32 (int8).
    return {4: 8, 2: 16, 1: 32}.get(itemsize, 8)


def _concat_staged(xs_flat, offsets, sizes, n, f_total, dtype, itemsize,
                   target_bytes=2 << 20):
    gran = _sublane_multiple(itemsize)

    bn = max(1, target_bytes // (f_total * itemsize))
    bn = max(gran, (bn // gran) * gran)
    bn = min(bn, n)
    grid = (pl.cdiv(n, bn),)  # ragged last block is masked by Pallas

    def padded(rows, cols):
        pr = -(-rows // gran) * gran
        pc = -(-cols // 128) * 128
        return pr * pc * itemsize

    block_bytes = sum(padded(bn, f) for f in sizes) + padded(bn, f_total)
    # Double-buffered blocks plus headroom; keep well below v7x's 64 MiB VMEM.
    vmem_limit = int(min(max(4 * block_bytes, 16 << 20), 48 << 20))

    kernel = functools.partial(
        _concat_staged_kernel, offsets=offsets, sizes=sizes)
    in_specs = [pl.BlockSpec((bn, f), lambda i: (i, 0)) for f in sizes]
    out_spec = pl.BlockSpec((bn, f_total), lambda i: (i, 0))

    total_bytes = n * sum(sizes) * itemsize
    cost = pl.CostEstimate(
        flops=0, transcendentals=0, bytes_accessed=2 * total_bytes)

    return pl.pallas_call(
        kernel,
        out_shape=jax.ShapeDtypeStruct((n, f_total), dtype),
        grid=grid,
        in_specs=in_specs,
        out_specs=out_spec,
        compiler_params=pltpu.CompilerParams(
            dimension_semantics=("parallel",),
            vmem_limit_bytes=vmem_limit,
        ),
        cost_estimate=cost,
    )(*xs_flat)


# -----------------------------------------------------------------------------
# Public wrapper: torch.cat(xs, dim=1) for NCHW tensors.
# -----------------------------------------------------------------------------
def concatenate_channels(*xs):
    assert len(xs) >= 1
    if len(xs) == 1:
        return xs[0]  # cat of a single tensor is the tensor itself

    n, _, h, w = xs[0].shape
    dtype = xs[0].dtype
    for x in xs:
        assert x.ndim == 4
        assert x.shape[0] == n and x.shape[2] == h and x.shape[3] == w
        assert x.dtype == dtype

    channels = tuple(int(x.shape[1]) for x in xs)
    c_total = sum(channels)
    hw = h * w

    # Lane-dense flattened layout: per-sample NCHW data is contiguous per
    # channel block, so channel concat == concat along the flattened axis.
    sizes = tuple(c * hw for c in channels)
    offsets = []
    acc = 0
    for f in sizes:
        offsets.append(acc)
        acc += f
    offsets = tuple(offsets)
    f_total = acc

    xs_flat = [x.reshape(n, f) for x, f in zip(xs, sizes)]
    itemsize = jnp.dtype(dtype).itemsize

    # Direct HBM->HBM DMA unless per-row contiguous chunks are tiny.
    if min(sizes) * itemsize >= 512:
        out_flat = _concat_via_dma(
            xs_flat, offsets, sizes, n, f_total, dtype, itemsize)
    else:
        out_flat = _concat_staged(
            xs_flat, offsets, sizes, n, f_total, dtype, itemsize)

    # TODO(synk): the roofline-beating option is to alias/fuse the concat into
    # producers/consumers (write directly into column slices of a shared
    # buffer); that requires changing the caller API, so it is not done here.
    return out_flat.reshape(n, c_total, h, w)


if __name__ == "__main__":
    key = jax.random.PRNGKey(0)
    k1, k2, k3, k4, k5 = jax.random.split(key, 5)

    # Main test: NCHW inputs with differing channel counts (torch.cat(x, 1)).
    # Exercises the direct HBM->HBM DMA path.
    x1 = jax.random.normal(k1, (2, 4, 16, 16), dtype=jnp.float32)
    x2 = jax.random.normal(k2, (2, 3, 16, 16), dtype=jnp.float32)
    x3 = jax.random.normal(k3, (2, 5, 16, 16), dtype=jnp.float32)

    out = concatenate_channels(x1, x2, x3)
    out = jax.block_until_ready(out)
    ref = jnp.concatenate([x1, x2, x3], axis=1)
    assert out.shape == (2, 12, 16, 16)
    assert jnp.array_equal(out, ref)

    # Secondary test: tiny per-row chunks exercise the staged-VMEM fallback.
    y1 = jax.random.normal(k4, (2, 2, 4, 4), dtype=jnp.float32)
    y2 = jax.random.normal(k5, (2, 3, 4, 4), dtype=jnp.float32)
    out2 = jax.block_until_ready(concatenate_channels(y1, y2))
    assert jnp.array_equal(out2, jnp.concatenate([y1, y2], axis=1))

    print("KERNEL_OK")
</pallas_src>

<mosaic_0001>
module attributes {stable_mosaic.version = 11 : i64} {
  func.func @_concat_dma_kernel(%arg0: memref<2x1024xf32, #tpu.memory_space<any>>, %arg1: memref<2x768xf32, #tpu.memory_space<any>>, %arg2: memref<2x1280xf32, #tpu.memory_space<any>>, %arg3: memref<2x3072xf32, #tpu.memory_space<any>>, %arg4: memref<3x1x!tpu.dma_semaphore, #tpu.memory_space<semaphore_mem>>) attributes {dimension_semantics = [], scalar_prefetch = 0 : i64, scratch_operands = 1 : i64, tpu.core_type = #tpu.core_type<tc>} {
    %c0_i32 = arith.constant 0 : i32
    %c0_i32_0 = arith.constant 0 : i32
    %c0_i32_1 = arith.constant 0 : i32
    %c0_i32_2 = arith.constant 0 : i32
    %0 = tpu.memref_slice %arg0[%c0_i32_1, %c0_i32_2] : memref<2x1024xf32, #tpu.memory_space<any>> -> memref<2x1024xf32, #tpu.memory_space<any>>
    %c0_i32_3 = arith.constant 0 : i32
    %c0_i32_4 = arith.constant 0 : i32
    %1 = tpu.memref_slice %arg3[%c0_i32_3, %c0_i32_4] : memref<2x3072xf32, #tpu.memory_space<any>> -> memref<2x1024xf32, #tpu.memory_space<any>>
    %2 = tpu.memref_slice %arg4[%c0_i32, %c0_i32_0] : memref<3x1x!tpu.dma_semaphore, #tpu.memory_space<semaphore_mem>> -> memref<1x1x!tpu.dma_semaphore, #tpu.memory_space<semaphore_mem>>
    %3 = tpu.memref_squeeze %2 : memref<1x1x!tpu.dma_semaphore, #tpu.memory_space<semaphore_mem>> -> memref<!tpu.dma_semaphore, #tpu.memory_space<semaphore_mem>>
    tpu.enqueue_dma source(%0 : memref<2x1024xf32, #tpu.memory_space<any>>) target(%1 : memref<2x1024xf32, #tpu.memory_space<any>>) target_semaphore(%3 : memref<!tpu.dma_semaphore, #tpu.memory_space<semaphore_mem>>)
    %c1_i32 = arith.constant 1 : i32
    %c0_i32_5 = arith.constant 0 : i32
    %c0_i32_6 = arith.constant 0 : i32
    %c0_i32_7 = arith.constant 0 : i32
    %4 = tpu.memref_slice %arg1[%c0_i32_6, %c0_i32_7] : memref<2x768xf32, #tpu.memory_space<any>> -> memref<2x768xf32, #tpu.memory_space<any>>
    %c0_i32_8 = arith.constant 0 : i32
    %c1024_i32 = arith.constant 1024 : i32
    %5 = tpu.memref_slice %arg3[%c0_i32_8, %c1024_i32] : memref<2x3072xf32, #tpu.memory_space<any>> -> memref<2x768xf32, #tpu.memory_space<any>>
    %6 = tpu.memref_slice %arg4[%c1_i32, %c0_i32_5] : memref<3x1x!tpu.dma_semaphore, #tpu.memory_space<semaphore_mem>> -> memref<1x1x!tpu.dma_semaphore, #tpu.memory_space<semaphore_mem>>
    %7 = tpu.memref_squeeze %6 : memref<1x1x!tpu.dma_semaphore, #tpu.memory_space<semaphore_mem>> -> memref<!tpu.dma_semaphore, #tpu.memory_space<semaphore_mem>>
    tpu.enqueue_dma source(%4 : memref<2x768xf32, #tpu.memory_space<any>>) target(%5 : memref<2x768xf32, #tpu.memory_space<any>>) target_semaphore(%7 : memref<!tpu.dma_semaphore, #tpu.memory_space<semaphore_mem>>)
    %c2_i32 = arith.constant 2 : i32
    %c0_i32_9 = arith.constant 0 : i32
    %c0_i32_10 = arith.constant 0 : i32
    %c0_i32_11 = arith.constant 0 : i32
    %8 = tpu.memref_slice %arg2[%c0_i32_10, %c0_i32_11] : memref<2x1280xf32, #tpu.memory_space<any>> -> memref<2x1280xf32, #tpu.memory_space<any>>
    %c0_i32_12 = arith.constant 0 : i32
    %c1792_i32 = arith.constant 1792 : i32
    %9 = tpu.memref_slice %arg3[%c0_i32_12, %c1792_i32] : memref<2x3072xf32, #tpu.memory_space<any>> -> memref<2x1280xf32, #tpu.memory_space<any>>
    %10 = tpu.memref_slice %arg4[%c2_i32, %c0_i32_9] : memref<3x1x!tpu.dma_semaphore, #tpu.memory_space<semaphore_mem>> -> memref<1x1x!tpu.dma_semaphore, #tpu.memory_space<semaphore_mem>>
    %11 = tpu.memref_squeeze %10 : memref<1x1x!tpu.dma_semaphore, #tpu.memory_space<semaphore_mem>> -> memref<!tpu.dma_semaphore, #tpu.memory_space<semaphore_mem>>
    tpu.enqueue_dma source(%8 : memref<2x1280xf32, #tpu.memory_space<any>>) target(%9 : memref<2x1280xf32, #tpu.memory_space<any>>) target_semaphore(%11 : memref<!tpu.dma_semaphore, #tpu.memory_space<semaphore_mem>>)
    %c0_i32_13 = arith.constant 0 : i32
    %c0_i32_14 = arith.constant 0 : i32
    %c0_i32_15 = arith.constant 0 : i32
    %c0_i32_16 = arith.constant 0 : i32
    %12 = tpu.memref_slice %arg0[%c0_i32_15, %c0_i32_16] : memref<2x1024xf32, #tpu.memory_space<any>> -> memref<2x1024xf32, #tpu.memory_space<any>>
    %c0_i32_17 = arith.constant 0 : i32
    %c0_i32_18 = arith.constant 0 : i32
    %13 = tpu.memref_slice %arg3[%c0_i32_17, %c0_i32_18] : memref<2x3072xf32, #tpu.memory_space<any>> -> memref<2x1024xf32, #tpu.memory_space<any>>
    %14 = tpu.memref_slice %arg4[%c0_i32_13, %c0_i32_14] : memref<3x1x!tpu.dma_semaphore, #tpu.memory_space<semaphore_mem>> -> memref<1x1x!tpu.dma_semaphore, #tpu.memory_space<semaphore_mem>>
    %15 = tpu.memref_squeeze %14 : memref<1x1x!tpu.dma_semaphore, #tpu.memory_space<semaphore_mem>> -> memref<!tpu.dma_semaphore, #tpu.memory_space<semaphore_mem>>
    tpu.wait_dma2 semaphore(%15 : memref<!tpu.dma_semaphore, #tpu.memory_space<semaphore_mem>>) src(%12 : memref<2x1024xf32, #tpu.memory_space<any>>) dst(%13 : memref<2x1024xf32, #tpu.memory_space<any>>)
    %c1_i32_19 = arith.constant 1 : i32
    %c0_i32_20 = arith.constant 0 : i32
    %c0_i32_21 = arith.constant 0 : i32
    %c0_i32_22 = arith.constant 0 : i32
    %16 = tpu.memref_slice %arg1[%c0_i32_21, %c0_i32_22] : memref<2x768xf32, #tpu.memory_space<any>> -> memref<2x768xf32, #tpu.memory_space<any>>
    %c0_i32_23 = arith.constant 0 : i32
    %c1024_i32_24 = arith.constant 1024 : i32
    %17 = tpu.memref_slice %arg3[%c0_i32_23, %c1024_i32_24] : memref<2x3072xf32, #tpu.memory_space<any>> -> memref<2x768xf32, #tpu.memory_space<any>>
    %18 = tpu.memref_slice %arg4[%c1_i32_19, %c0_i32_20] : memref<3x1x!tpu.dma_semaphore, #tpu.memory_space<semaphore_mem>> -> memref<1x1x!tpu.dma_semaphore, #tpu.memory_space<semaphore_mem>>
    %19 = tpu.memref_squeeze %18 : memref<1x1x!tpu.dma_semaphore, #tpu.memory_space<semaphore_mem>> -> memref<!tpu.dma_semaphore, #tpu.memory_space<semaphore_mem>>
    tpu.wait_dma2 semaphore(%19 : memref<!tpu.dma_semaphore, #tpu.memory_space<semaphore_mem>>) src(%16 : memref<2x768xf32, #tpu.memory_space<any>>) dst(%17 : memref<2x768xf32, #tpu.memory_space<any>>)
    %c2_i32_25 = arith.constant 2 : i32
    %c0_i32_26 = arith.constant 0 : i32
    %c0_i32_27 = arith.constant 0 : i32
    %c0_i32_28 = arith.constant 0 : i32
    %20 = tpu.memref_slice %arg2[%c0_i32_27, %c0_i32_28] : memref<2x1280xf32, #tpu.memory_space<any>> -> memref<2x1280xf32, #tpu.memory_space<any>>
    %c0_i32_29 = arith.constant 0 : i32
    %c1792_i32_30 = arith.constant 1792 : i32
    %21 = tpu.memref_slice %arg3[%c0_i32_29, %c1792_i32_30] : memref<2x3072xf32, #tpu.memory_space<any>> -> memref<2x1280xf32, #tpu.memory_space<any>>
    %22 = tpu.memref_slice %arg4[%c2_i32_25, %c0_i32_26] : memref<3x1x!tpu.dma_semaphore, #tpu.memory_space<semaphore_mem>> -> memref<1x1x!tpu.dma_semaphore, #tpu.memory_space<semaphore_mem>>
    %23 = tpu.memref_squeeze %22 : memref<1x1x!tpu.dma_semaphore, #tpu.memory_space<semaphore_mem>> -> memref<!tpu.dma_semaphore, #tpu.memory_space<semaphore_mem>>
    tpu.wait_dma2 semaphore(%23 : memref<!tpu.dma_semaphore, #tpu.memory_space<semaphore_mem>>) src(%20 : memref<2x1280xf32, #tpu.memory_space<any>>) dst(%21 : memref<2x1280xf32, #tpu.memory_space<any>>)
    return
  }
}

</mosaic_0001>

<bundles_post_ra>
// kernel: tpu_custom_call.1
= control target key start
LH: loop header
LB: loop body
LE: loop exit
PB: predicated region body
PF: predicated region fallthrough
CT: control target
= control target key end

     0   :  { %s91_s21 = smov [#allocation2]   ;;  %s92_s22 = smov [#allocation3]   ;;  %s136_s0 = inlined_call_operand.hbm [shape: f32[2,1024], index: 0, kind: input, shape index: {}]   ;;  %s137_s3 = inlined_call_operand.hbm [shape: f32[2,3072], index: 3, kind: output, shape index: {}]   ;;  %s138_s1 = inlined_call_operand.hbm [shape: f32[2,768], index: 1, kind: input, shape index: {}]   ;;  %s139_s2 = inlined_call_operand.hbm [shape: f32[2,1280], index: 2, kind: input, shape index: {}]  }
   0x1   :  { %s12_s14 = sshll.u32 %s136_s0, 4  ;;  %s14_s17 = sshll.u32 %s137_s3, 4  ;;  %s13_s14 = int_to_ptr.hbm [resolvable:$true] %s12_s14  ;;  %s15_s17 = int_to_ptr.hbm [resolvable:$true] %s14_s17 }
   0x2   :  { %s19_s20 = scalar_lea.hbm %s137_s3, 16  ;;  %s93_s23 = smov 0  }
   0x3   :  { %18 = dma.general %s13_s14, 256, %s15_s17, %s91_s21, %s92_s22, [#allocation4], %s93_s23, 0  }
   0x4   :  { %s25_s26 = sshll.u32 %s138_s1, 4  ;;  %s27_s27 = sshll.u32 %s19_s20, 4  ;;  %s26_s26 = int_to_ptr.hbm [resolvable:$true] %s25_s26  ;;  %s28_s27 = int_to_ptr.hbm [resolvable:$true] %s27_s27 }
   0x5   :  { %s94_s0 = smov [#allocation2 + $0x1]   ;;  %s95_s28 = smov [#allocation5]  }
   0x6   :  { %31 = dma.general %s26_s26, 192, %s28_s27, %s94_s0, %s95_s28, [#allocation6], %s93_s23, 0  }
   0x7   :  { %s32_s4 = scalar_lea.hbm %s137_s3, 28  ;;  %s38_s7 = sshll.u32 %s139_s2, 4  ;;  %s39_s7 = int_to_ptr.hbm [resolvable:$true] %s38_s7 }
   0x8   :  { %s40_s8 = sshll.u32 %s32_s4, 4  ;;  %s96_s9 = smov [#allocation2 + $0x2]   ;;  %s41_s8 = int_to_ptr.hbm [resolvable:$true] %s40_s8 }
   0x9   :  { %s97_s10 = smov [#allocation7]  }
   0xa   :  { %44 = dma.general %s39_s7, 320, %s41_s8, %s96_s9, %s97_s10, [#allocation8], %s93_s23, 0  }
   0xb   :  { %85 = dma.done.wait [#allocation2], 256 }
   0xc   :  { %86 = vsyncadd [#allocation2], 4294967040 }
   0xd   :  { %87 = dma.done.wait [#allocation2 + $0x1], 192 }
   0xe   :  { %88 = vsyncadd [#allocation2 + $0x1], 4294967104 }
   0xf   :  { %89 = dma.done.wait [#allocation2 + $0x2], 320 }
  0x10   :  { %90 = vsyncadd [#allocation2 + $0x2], 4294966976 }
  0x11   :  { %55 = vsyncmov [#allocation2] }
  0x14   :  { %s56_s1 = vpop.sfrf %55 }
  0x15   :  { %p75_p0 = scmp.ne.s32.totalorder %s56_s1, 0 }
  0x17   :  { %60 = shalt.err (%p75_p0)  }
  0x18   :  { %62 = vsyncmov [#allocation2 + $0x1] }
  0x1b   :  { %s63_s3 = vpop.sfrf %62 }
  0x1c   :  { %p76_p1 = scmp.ne.s32.totalorder %s63_s3, 0 }
  0x1e   :  { %67 = shalt.err (%p76_p1)  }
  0x1f   :  { %69 = vsyncmov [#allocation2 + $0x2] }
  0x22   :  { %s70_s2 = vpop.sfrf %69 }
  0x23   :  { %p77_p2 = scmp.ne.s32.totalorder %s70_s2, 0 }
  0x25   :  { %74 = shalt.err (%p77_p2)  }

</bundles_post_ra>
